<compile_context>
chip_gen: v6e
topology: v6e:2x2x1
jax: 0.10.0
libtpu: 0.0.40
codegen_flags: <defaults>
</compile_context>

<pallas_src>
import math
import functools

import jax
import jax.numpy as jnp
from jax.experimental import pallas as pl
from jax.experimental.pallas import tpu as pltpu


def _mhsa_kernel(x_ref, wqkv_ref, bqkv_ref, wo_ref, bo_ref, o_ref, *,
                 n_heads: int, seq_len: int):
    """One grid step == `bb` batch elements, rows packed as (bb*T, D).

    x_ref:    (bb*T, D)  dense activation slab (batch-major row blocks)
    wqkv_ref: (D, 3D)    fused, pre-transposed Q/K/V weights (scale in Q part)
    bqkv_ref: (1, 3D)    fused biases (scale folded into the Q part)
    wo_ref:   (D, D)     pre-transposed output projection weight
    bo_ref:   (1, D)     output projection bias
    o_ref:    (bb*T, D)  output slab
    """
    BT, D = x_ref.shape
    T = seq_len
    bb = BT // T
    H = n_heads
    hd = D // H

    x = x_ref[...]                                                   # (bb*T, D)

    # Fused Q/K/V projection: one MXU push over all bb*T rows.
    qkv = jnp.dot(x, wqkv_ref[...],
                  preferred_element_type=jnp.float32) + bqkv_ref[0]  # (bb*T, 3D)

    # Q/K/V split: three static lane slices; leading-dim reshapes are free.
    q = qkv[:, 0 * D:1 * D].reshape(bb, T, D)
    k = qkv[:, 1 * D:2 * D].reshape(bb, T, D)
    v = qkv[:, 2 * D:3 * D].reshape(bb, T, D)

    # Per-head lane mask (1, H, 1, D): 1.0 on head h's hd columns, else 0.
    # Masking K restricts the score contraction to head-h columns (Q needs no
    # mask), and masking V makes each head's output land only on its own lanes
    # so the later sum over heads re-packs the concat layout with VPU adds.
    d_idx = jax.lax.broadcasted_iota(jnp.int32, (1, H, 1, D), 3)
    h_idx = jax.lax.broadcasted_iota(jnp.int32, (1, H, 1, D), 1)
    lo = h_idx * hd
    head_mask = jnp.logical_and(d_idx >= lo, d_idx < lo + hd).astype(jnp.float32)

    qh = jnp.broadcast_to(q[:, None], (bb, H, T, D)).reshape(bb * H, T, D)
    kh = (k[:, None] * head_mask).reshape(bb * H, T, D)
    vh = (v[:, None] * head_mask).reshape(bb * H, T, D)

    # Scaled dot-product attention, batched over bb*H "heads".
    # (1/sqrt(hd) already folded into the Q projection weights/bias.)
    s = jnp.einsum('bqd,bkd->bqk', qh, kh,
                   preferred_element_type=jnp.float32)               # (bb*H, T, T)
    s = s - jnp.max(s, axis=-1, keepdims=True)                       # stable softmax
    p = jnp.exp(s)
    p = p * pl.reciprocal(jnp.sum(p, axis=-1, keepdims=True), approx=True)

    o = jnp.einsum('bqk,bkd->bqd', p, vh,
                   preferred_element_type=jnp.float32)               # (bb*H, T, D)

    # Heads are disjoint on lanes (masked V) -> summing the leading head axis
    # is exactly the per-head concat; then one dense output projection.
    o_cat = jnp.sum(o.reshape(bb, H, T, D), axis=1).reshape(BT, D)   # (bb*T, D)
    out = jnp.dot(o_cat, wo_ref[...],
                  preferred_element_type=jnp.float32) + bo_ref[0]
    o_ref[...] = out.astype(o_ref.dtype)


def _round_up(n, m):
    return (n + m - 1) // m * m


def _tiled_bytes(shape, dtype_bytes=4):
    """Bytes actually DMA'd for a >=2D f32 block after (8,128) tile padding."""
    lead = 1
    for s in shape[:-2]:
        lead *= s
    return lead * _round_up(shape[-2], 8) * _round_up(shape[-1], 128) * dtype_bytes


def temporal_first_mhsa(x_tbd, params, n_heads: int, batch_block=None):
    """x_tbd: (T, B, D) float32 (temporal-first). Returns (T, B, D)."""
    T, B, D = x_tbd.shape
    assert D % n_heads == 0
    hd = D // n_heads
    scale = 1.0 / math.sqrt(hd)

    # Collapsed single-step grid by default: per-grid-step overhead (~0.35us)
    # rivals the whole compute at these shapes.  batch_block < B re-enables a
    # multi-step "parallel" grid (e.g. for v7x megacore benchmarking).
    if batch_block is None:
        batch_block = B
    assert B % batch_block == 0
    n_steps = B // batch_block

    wq, bq, wk, bk, wv, bv, wo, bo = params

    # Host-side weight prep (folded by XLA): transpose to x @ W layout, fold
    # 1/sqrt(hd) into the Q projection, fuse Q/K/V into one (D, 3D) matrix.
    wqkv_t = jnp.concatenate([wq.T * scale, wk.T, wv.T], axis=1)      # (D, 3D)
    bqkv = jnp.concatenate([bq * scale, bk, bv]).reshape(1, 3 * D)    # (1, 3D)
    wo_t = wo.T                                                       # (D, D)
    bo2 = bo.reshape(1, D)                                            # (1, D)

    # Layout plumbing (XLA-side, mirrors the module's own transpose): present
    # a lane/sublane-dense activation slab with batch folded into the rows.
    x2 = jnp.transpose(x_tbd, (1, 0, 2)).reshape(B * T, D)            # (B*T, D)

    rows = batch_block * T
    x_spec = pl.BlockSpec((rows, D), lambda i: (i, 0))
    wqkv_spec = pl.BlockSpec((D, 3 * D), lambda i: (0, 0))
    bqkv_spec = pl.BlockSpec((1, 3 * D), lambda i: (0, 0))
    wo_spec = pl.BlockSpec((D, D), lambda i: (0, 0))
    bo_spec = pl.BlockSpec((1, D), lambda i: (0, 0))

    kernel = functools.partial(_mhsa_kernel, n_heads=n_heads, seq_len=T)

    # Advisory cost estimate; bytes = actual (8,128)-tiled DMA traffic.
    flops = (2 * B * T * D * 3 * D             # fused QKV projection
             + 2 * B * n_heads * T * T * D     # scores (masked full-D contraction)
             + 2 * B * n_heads * T * T * D     # attention @ V
             + 2 * B * T * D * D)              # output projection
    transcendentals = B * n_heads * T * (T + 1)  # exp + reciprocal
    bytes_accessed = (
        2 * n_steps * _tiled_bytes((rows, D))    # x in + out
        + _tiled_bytes((D, 3 * D)) + _tiled_bytes((1, 3 * D))
        + _tiled_bytes((D, D)) + _tiled_bytes((1, D)))

    out2 = pl.pallas_call(
        kernel,
        out_shape=jax.ShapeDtypeStruct((B * T, D), jnp.float32),
        grid_spec=pltpu.PrefetchScalarGridSpec(
            num_scalar_prefetch=0,
            grid=(n_steps,),
            in_specs=[x_spec, wqkv_spec, bqkv_spec, wo_spec, bo_spec],
            out_specs=x_spec,
        ),
        compiler_params=pltpu.CompilerParams(
            dimension_semantics=("parallel",)),
        cost_estimate=pl.CostEstimate(
            flops=flops,
            transcendentals=transcendentals,
            bytes_accessed=bytes_accessed),
    )(x2, wqkv_t, bqkv, wo_t, bo2)

    # Back to the module's temporal-first output layout.
    return jnp.transpose(out2.reshape(B, T, D), (1, 0, 2))


def _reference(x_tbd, params, n_heads: int):
    """Pure-JAX reference mirroring the PyTorch module, for verification."""
    wq, bq, wk, bk, wv, bv, wo, bo = params
    x = jnp.transpose(x_tbd, (1, 0, 2))           # (B, T, D)
    B, T, D = x.shape
    hd = D // n_heads

    q = x @ wq.T + bq
    k = x @ wk.T + bk
    v = x @ wv.T + bv

    def split(t):                                  # (B, T, D) -> (B, H, T, hd)
        return jnp.transpose(t.reshape(B, T, n_heads, hd), (0, 2, 1, 3))

    qh, kh, vh = split(q), split(k), split(v)
    s = jnp.einsum('bhqd,bhkd->bhqk', qh, kh) / math.sqrt(hd)
    p = jax.nn.softmax(s, axis=-1)
    o = jnp.einsum('bhqk,bhkd->bhqd', p, vh)
    o = jnp.transpose(o, (0, 2, 1, 3)).reshape(B, T, D)
    o = o @ wo.T + bo
    return jnp.transpose(o, (1, 0, 2))


def init_params(key, dim):
    """Deterministic init of 4x nn.Linear(dim, dim) (weight (D,D), bias (D,))."""
    ks = jax.random.split(key, 8)
    bound = 1.0 / math.sqrt(dim)

    def lin(kw, kb):
        w = jax.random.uniform(kw, (dim, dim), jnp.float32, -bound, bound)
        b = jax.random.uniform(kb, (dim,), jnp.float32, -bound, bound)
        return w, b

    wq, bq = lin(ks[0], ks[1])
    wk, bk = lin(ks[2], ks[3])
    wv, bv = lin(ks[4], ks[5])
    wo, bo = lin(ks[6], ks[7])
    return (wq, bq, wk, bk, wv, bv, wo, bo)


if __name__ == "__main__":
    # Small shapes consistent with the module: seq=8, batch=2, dim=32, 4 heads.
    T, B, D, H = 8, 2, 32, 4

    key = jax.random.PRNGKey(0)
    k_x, k_p = jax.random.split(key)
    x = jax.random.normal(k_x, (T, B, D), jnp.float32)   # temporal-first input
    params = init_params(k_p, D)

    out = temporal_first_mhsa(x, params, n_heads=H)
    out = jax.block_until_ready(out)

    ref = _reference(x, params, n_heads=H)
    assert out.shape == (T, B, D)
    # approx reciprocal in the softmax denominator -> slightly looser tolerance
    assert jnp.allclose(out, ref, atol=1e-3, rtol=1e-3), "mismatch vs reference"

    print("KERNEL_OK")
</pallas_src>

<mosaic_0001>
module attributes {stable_mosaic.version = 11 : i64} {
  func.func @_mhsa_kernel(%arg0: i32, %arg1: memref<16x32xf32, #tpu.memory_space<vmem>>, %arg2: memref<32x96xf32, #tpu.memory_space<vmem>>, %arg3: memref<1x96xf32, #tpu.memory_space<vmem>>, %arg4: memref<32x32xf32, #tpu.memory_space<vmem>>, %arg5: memref<1x32xf32, #tpu.memory_space<vmem>>, %arg6: memref<16x32xf32, #tpu.memory_space<vmem>>) attributes {dimension_semantics = [#tpu.dimension_semantics<parallel>], iteration_bounds = array<i64: 1>, scalar_prefetch = 0 : i64, scratch_operands = 0 : i64, tpu.core_type = #tpu.core_type<tc>, window_params = [{transform_indices = @transform_0, window_bounds = array<i64: 16, 32>}, {pipeline_mode = #tpu.pipeline_mode<synchronous>, transform_indices = @transform_1, window_bounds = array<i64: 32, 96>}, {pipeline_mode = #tpu.pipeline_mode<synchronous>, transform_indices = @transform_2, window_bounds = array<i64: 1, 96>}, {pipeline_mode = #tpu.pipeline_mode<synchronous>, transform_indices = @transform_3, window_bounds = array<i64: 32, 32>}, {pipeline_mode = #tpu.pipeline_mode<synchronous>, transform_indices = @transform_4, window_bounds = array<i64: 1, 32>}, {transform_indices = @transform_5, window_bounds = array<i64: 16, 32>}]} {
    %c0 = arith.constant 0 : index
    %c0_0 = arith.constant 0 : index
    %0 = vector.load %arg1[%c0, %c0_0] : memref<16x32xf32, #tpu.memory_space<vmem>>, vector<16x32xf32>
    %c0_1 = arith.constant 0 : index
    %c0_2 = arith.constant 0 : index
    %1 = vector.load %arg2[%c0_1, %c0_2] : memref<32x96xf32, #tpu.memory_space<vmem>>, vector<32x96xf32>
    %cst = arith.constant dense<0.000000e+00> : vector<16x96xf32>
    %2 = tpu.matmul %0, %1, %cst {dimension_numbers = #tpu.dot_dimension_numbers<[1], [0], [0], [1], [0, 0, 1, 1], [], []>} : vector<16x32xf32>, vector<32x96xf32>, vector<16x96xf32> -> vector<16x96xf32>
    %c0_3 = arith.constant 0 : index
    %c0_4 = arith.constant 0 : index
    %3 = vector.load %arg3[%c0_3, %c0_4] : memref<1x96xf32, #tpu.memory_space<vmem>>, vector<1x96xf32>
    %4 = vector.shape_cast %3 : vector<1x96xf32> to vector<96xf32>
    %5 = vector.shape_cast %4 : vector<96xf32> to vector<1x96xf32>
    %6 = vector.broadcast %5 : vector<1x96xf32> to vector<16x96xf32>
    %7 = arith.addf %2, %6 : vector<16x96xf32>
    %8 = vector.extract_strided_slice %7 {offsets = [0, 0], sizes = [16, 32], strides = [1, 1]} : vector<16x96xf32> to vector<16x32xf32>
    %9 = vector.shape_cast %8 : vector<16x32xf32> to vector<2x8x32xf32>
    %10 = vector.extract_strided_slice %7 {offsets = [0, 32], sizes = [16, 32], strides = [1, 1]} : vector<16x96xf32> to vector<16x32xf32>
    %11 = vector.shape_cast %10 : vector<16x32xf32> to vector<2x8x32xf32>
    %12 = vector.extract_strided_slice %7 {offsets = [0, 64], sizes = [16, 32], strides = [1, 1]} : vector<16x96xf32> to vector<16x32xf32>
    %13 = vector.shape_cast %12 : vector<16x32xf32> to vector<2x8x32xf32>
    %14 = tpu.iota {dimensions = array<i32: 3>} : vector<1x4x1x32xi32>
    %15 = tpu.iota {dimensions = array<i32: 1>} : vector<1x4x1x32xi32>
    %c8_i32 = arith.constant 8 : i32
    %16 = vector.broadcast %c8_i32 : i32 to vector<1x4x1x32xi32>
    %17 = arith.muli %15, %16 : vector<1x4x1x32xi32>
    %18 = arith.cmpi sge, %14, %17 : vector<1x4x1x32xi32>
    %c8_i32_5 = arith.constant 8 : i32
    %19 = vector.broadcast %c8_i32_5 : i32 to vector<1x4x1x32xi32>
    %20 = arith.addi %17, %19 : vector<1x4x1x32xi32>
    %21 = arith.cmpi slt, %14, %20 : vector<1x4x1x32xi32>
    %22 = arith.andi %18, %21 : vector<1x4x1x32xi1>
    %23 = arith.extui %22 : vector<1x4x1x32xi1> to vector<1x4x1x32xi32>
    %24 = arith.sitofp %23 : vector<1x4x1x32xi32> to vector<1x4x1x32xf32>
    %25 = vector.shape_cast %9 : vector<2x8x32xf32> to vector<2x1x8x32xf32>
    %26 = vector.shape_cast %25 : vector<2x1x8x32xf32> to vector<2x1x8x32xf32>
    %27 = vector.broadcast %26 : vector<2x1x8x32xf32> to vector<2x4x8x32xf32>
    %28 = vector.shape_cast %27 : vector<2x4x8x32xf32> to vector<8x8x32xf32>
    %29 = vector.shape_cast %11 : vector<2x8x32xf32> to vector<2x1x8x32xf32>
    %30 = vector.broadcast %29 : vector<2x1x8x32xf32> to vector<2x4x8x32xf32>
    %31 = vector.broadcast %24 : vector<1x4x1x32xf32> to vector<2x4x8x32xf32>
    %32 = arith.mulf %30, %31 : vector<2x4x8x32xf32>
    %33 = vector.shape_cast %32 : vector<2x4x8x32xf32> to vector<8x8x32xf32>
    %34 = vector.shape_cast %13 : vector<2x8x32xf32> to vector<2x1x8x32xf32>
    %35 = vector.broadcast %34 : vector<2x1x8x32xf32> to vector<2x4x8x32xf32>
    %36 = vector.broadcast %24 : vector<1x4x1x32xf32> to vector<2x4x8x32xf32>
    %37 = arith.mulf %35, %36 : vector<2x4x8x32xf32>
    %38 = vector.shape_cast %37 : vector<2x4x8x32xf32> to vector<8x8x32xf32>
    "tpu.trace_start"() <{level = 10 : i32, message = "bqd,bkd->bqk"}> : () -> ()
    %cst_6 = arith.constant dense<0.000000e+00> : vector<8x8x8xf32>
    %39 = tpu.matmul %28, %33, %cst_6 {dimension_numbers = #tpu.dot_dimension_numbers<[2], [2], [1], [1], [0, 0, 0, 1, 1, 1], [0], [0]>} : vector<8x8x32xf32>, vector<8x8x32xf32>, vector<8x8x8xf32> -> vector<8x8x8xf32>
    "tpu.trace_stop"() : () -> ()
    %cst_7 = arith.constant dense<0xFF800000> : vector<8x8xf32>
    %40 = vector.multi_reduction <maximumf>, %39, %cst_7 [2] : vector<8x8x8xf32> to vector<8x8xf32>
    %41 = vector.shape_cast %40 : vector<8x8xf32> to vector<8x8x1xf32>
    %42 = vector.broadcast %41 : vector<8x8x1xf32> to vector<8x8x8xf32>
    %43 = arith.subf %39, %42 : vector<8x8x8xf32>
    %44 = math.exp %43 : vector<8x8x8xf32>
    %cst_8 = arith.constant dense<0.000000e+00> : vector<8x8xf32>
    %45 = vector.multi_reduction <add>, %44, %cst_8 [2] : vector<8x8x8xf32> to vector<8x8xf32>
    %46 = vector.shape_cast %45 : vector<8x8xf32> to vector<8x8x1xf32>
    %47 = tpu.reciprocal %46 {approx = true} : vector<8x8x1xf32> -> vector<8x8x1xf32>
    %48 = vector.broadcast %47 : vector<8x8x1xf32> to vector<8x8x8xf32>
    %49 = arith.mulf %44, %48 : vector<8x8x8xf32>
    "tpu.trace_start"() <{level = 10 : i32, message = "bqk,bkd->bqd"}> : () -> ()
    %cst_9 = arith.constant dense<0.000000e+00> : vector<8x8x32xf32>
    %50 = tpu.matmul %49, %38, %cst_9 {dimension_numbers = #tpu.dot_dimension_numbers<[2], [1], [1], [2], [0, 0, 0, 1, 1, 2], [0], [0]>} : vector<8x8x8xf32>, vector<8x8x32xf32>, vector<8x8x32xf32> -> vector<8x8x32xf32>
    "tpu.trace_stop"() : () -> ()
    %51 = vector.shape_cast %50 : vector<8x8x32xf32> to vector<2x4x8x32xf32>
    %cst_10 = arith.constant dense<0.000000e+00> : vector<2x8x32xf32>
    %52 = vector.multi_reduction <add>, %51, %cst_10 [1] : vector<2x4x8x32xf32> to vector<2x8x32xf32>
    %53 = vector.shape_cast %52 : vector<2x8x32xf32> to vector<16x32xf32>
    %c0_11 = arith.constant 0 : index
    %c0_12 = arith.constant 0 : index
    %54 = vector.load %arg4[%c0_11, %c0_12] : memref<32x32xf32, #tpu.memory_space<vmem>>, vector<32x32xf32>
    %cst_13 = arith.constant dense<0.000000e+00> : vector<16x32xf32>
    %55 = tpu.matmul %53, %54, %cst_13 {dimension_numbers = #tpu.dot_dimension_numbers<[1], [0], [0], [1], [0, 0, 1, 1], [], []>} : vector<16x32xf32>, vector<32x32xf32>, vector<16x32xf32> -> vector<16x32xf32>
    %c0_14 = arith.constant 0 : index
    %c0_15 = arith.constant 0 : index
    %56 = vector.load %arg5[%c0_14, %c0_15] : memref<1x32xf32, #tpu.memory_space<vmem>>, vector<1x32xf32>
    %57 = vector.shape_cast %56 : vector<1x32xf32> to vector<32xf32>
    %58 = vector.shape_cast %57 : vector<32xf32> to vector<1x32xf32>
    %59 = vector.broadcast %58 : vector<1x32xf32> to vector<16x32xf32>
    %60 = arith.addf %55, %59 : vector<16x32xf32>
    %c0_16 = arith.constant 0 : index
    %c0_17 = arith.constant 0 : index
    %61 = vector.load %arg6[%c0_16, %c0_17] : memref<16x32xf32, #tpu.memory_space<vmem>>, vector<16x32xf32>
    tpu.vector_store %arg6[%c0_16, %c0_17], %60 {strides = array<i32>} : memref<16x32xf32, #tpu.memory_space<vmem>>, vector<16x32xf32>,
    return
  }
  func.func @transform_0(%arg0: i32) -> (i32, i32) {
    %c0_i32 = arith.constant 0 : i32
    %c0_i32_0 = arith.constant 0 : i32
    return %arg0, %c0_i32 : i32, i32
  }
  func.func @transform_1(%arg0: i32) -> (i32, i32) {
    %c0_i32 = arith.constant 0 : i32
    %c0_i32_0 = arith.constant 0 : i32
    %c0_i32_1 = arith.constant 0 : i32
    return %c0_i32, %c0_i32_0 : i32, i32
  }
  func.func @transform_2(%arg0: i32) -> (i32, i32) {
    %c0_i32 = arith.constant 0 : i32
    %c0_i32_0 = arith.constant 0 : i32
    %c0_i32_1 = arith.constant 0 : i32
    return %c0_i32, %c0_i32_0 : i32, i32
  }
  func.func @transform_3(%arg0: i32) -> (i32, i32) {
    %c0_i32 = arith.constant 0 : i32
    %c0_i32_0 = arith.constant 0 : i32
    %c0_i32_1 = arith.constant 0 : i32
    return %c0_i32, %c0_i32_0 : i32, i32
  }
  func.func @transform_4(%arg0: i32) -> (i32, i32) {
    %c0_i32 = arith.constant 0 : i32
    %c0_i32_0 = arith.constant 0 : i32
    %c0_i32_1 = arith.constant 0 : i32
    return %c0_i32, %c0_i32_0 : i32, i32
  }
  func.func @transform_5(%arg0: i32) -> (i32, i32) {
    %c0_i32 = arith.constant 0 : i32
    %c0_i32_0 = arith.constant 0 : i32
    return %arg0, %c0_i32 : i32, i32
  }
}

</mosaic_0001>

<bundles_post_ra>
// kernel: tpu_custom_call.1
= control target key start
LH: loop header
LB: loop body
LE: loop exit
PB: predicated region body
PF: predicated region fallthrough
CT: control target
= control target key end

     0   :  { %10 = vsyncpa [#allocation3], 0  ;;  %s2230_s0 = inlined_call_operand.hbm [shape: f32[16,32], index: 0, kind: input, shape index: {}]   ;;  %s2231_s1 = inlined_call_operand.hbm [shape: f32[32,96], index: 1, kind: input, shape index: {}]   ;;  %s2232_s2 = inlined_call_operand.vmem [shape: f32[1,96], index: 2, kind: input, shape index: {}]   ;;  %s2233_s3 = inlined_call_operand.hbm [shape: f32[32,32], index: 3, kind: input, shape index: {}]   ;;  %s2234_s4 = inlined_call_operand.vmem [shape: f32[1,32], index: 4, kind: input, shape index: {}]   ;;  %s2235_s5 = inlined_call_operand.hbm [shape: f32[16,32], index: 5, kind: output, shape index: {}]  }
   0x1   :  { %11 = vsyncpa [#allocation6], 0 }
   0x2   :  { %12 = vsyncpa [#allocation4], 0  ;;  %s1969_s18 = smov [#allocation5]   ;;  %s1970_s20 = smov [#allocation2]  }
   0x3   :  { %s30_s19 = sshll.u32 %s1969_s18, 4  ;;  %s18_s21 = sshll.u32 %s1970_s20, 4  ;;  %s31_s19 = int_to_ptr.vmem [resolvable:$true] %s30_s19  ;;  %s19_s21 = int_to_ptr.vmem [resolvable:$true] %s18_s21 }
   0x4   :  { %s1891_s22 = scalar_lea.vmem %s31_s19, 512  ;;  %p1896_p1 = scmp.lt.s32.totalorder %s31_s19, %s31_s19 }
   0x5   :  { %p1892_p0 = scmp.ne.s32.totalorder %s31_s19, %s1891_s22  ;;  %p1897_p2 = scmp.lt.s32.totalorder %s1891_s22, %s1891_s22 }
   0x7   :  { %p1898_p3 = por %p1897_p2, %p1896_p1 }
   0x9   :  { %p1899_p4 = pnand %p1898_p3, %p1892_p0 }
   0xb   :  { %1902 = shalt.err (!%p1899_p4)
}
   0xc   :  { %s1971_s23 = smov 128   ;;  %s1972_s24 = smov 8  }
   0xd   :  { %36 = dma.hbm_to_vmem [thread:$0]  %s2231_s1, 512, %s31_s19, [#allocation6], %s1971_s23, %s1971_s23, %s1972_s24  }
   0xe   :  { %s1911_s27 = scalar_lea.vmem %s19_s21, 256  ;;  %p1916_p6 = scmp.lt.s32.totalorder %s19_s21, %s19_s21 }
   0xf   :  { %p1912_p5 = scmp.ne.s32.totalorder %s19_s21, %s1911_s27  ;;  %p1917_p7 = scmp.lt.s32.totalorder %s1911_s27, %s1911_s27 }
  0x11   :  { %p1918_p8 = por %p1917_p7, %p1916_p6 }
  0x13   :  { %p1919_p9 = pnand %p1918_p8, %p1912_p5 }
  0x15   :  { %1922 = shalt.err (!%p1919_p9)
}
  0x16   :  { %24 = dma.hbm_to_vmem [thread:$0]  %s2230_s0, 256, %s19_s21, [#allocation3], %s1971_s23, %s1971_s23, %s1972_s24  }
  0x17   :  { %s1973_s30 = smov [#allocation7]  }
  0x18   :  { %s44_s6 = sshll.u32 %s1973_s30, 4  ;;  %s45_s6 = int_to_ptr.vmem [resolvable:$true] %s44_s6 }
  0x19   :  { %s1931_s7 = scalar_lea.vmem %s45_s6, 512  ;;  %p1936_p11 = scmp.lt.s32.totalorder %s45_s6, %s45_s6 }
  0x1a   :  { %p1932_p10 = scmp.ne.s32.totalorder %s45_s6, %s1931_s7  ;;  %p1937_p12 = scmp.lt.s32.totalorder %s1931_s7, %s1931_s7 }
  0x1c   :  { %p1938_p13 = por %p1937_p12, %p1936_p11 }
  0x1e   :  { %p1939_p0 = pnand %p1938_p13, %p1932_p10 }
  0x20   :  { %1942 = shalt.err (!%p1939_p0)
}
  0x21   :  { %50 = dma.hbm_to_vmem [thread:$0]  %s2233_s3, 512, %s45_s6, [#allocation6], %s1971_s23, %s1971_s23, %s1972_s24  }
  0x22   :  { %1963 = dma.done.wait [#allocation3], 256  }
  0x23   :  { %1964 = vsyncadd [#allocation3], 4294967040 }
  0x24   :  { %1965 = dma.done.wait [#allocation6], 1024  }
  0x25   :  { %1966 = vsyncadd [#allocation6], 4294966272  ;;  %v157_v0 = vlaneseq  ;;  %v1974_v1 = vmov 0.0   ;;  %vm75_vm6 = vcmask 261120   ;;  %s1975_s0 = smov 32   ;;  %v67_v5 = vld [vmem:[#allocation5 + $0x18] sm:$0xff] }
  0x26   :  { %1749 = vmatprep.subr.mxu1 %v1974_v1  ;;  %v66_v6 = vld [vmem:[#allocation5 + $0x10] sm:$0xff]  ;;  %1738 = vmatprep.subr.mxu0 %v67_v5  ;;  %v65_v9 = vld [vmem:[#allocation5 + $0x8] sm:$0xff]  ;;  %v64_v11 = vld [vmem:[#allocation5] sm:$0xff]  ;;  %vm1976_vm11 = vmmov 0   ;;  %s1977_s10 = smov 96   ;;  %vm829_vm12 = vcmask 64512  }
  0x27   :  { %v158_v2 = vand.u32 127, %v157_v0  ;;  %v62_v7 = vld [vmem:[#allocation2] sm:$0xff]  ;;  %1739 = vmatpush3.msra.mxu0 %v67_v5  ;;  %v63_v12 = vld [vmem:[#allocation2 + $0x8] sm:$0xff]  ;;  %1751 = vmatprep.mubr.msk.f32.mxu1 %vm1976_vm11, %v1974_v1  ;;  %s1979_s13 = smov [#allocation8]  }
  0x28   :  { %1746 = vmatprep.mubr.msk.f32.mxu0 %vm75_vm6, %v62_v7  ;;  %1740 = vmatprep.subr.mxu0 %v66_v6  ;;  %v1660_v16 = vld [vmem:[%s2232_s2] ss:$0 sm:$0xff]  ;;  %s1978_s2 = smov 64   ;;  %s1647_s14 = sshll.u32 %s1979_s13, 4  ;;  %s1648_s14 = int_to_ptr.vmem [resolvable:$true] %s1647_s14 }
  0x29   :  { %vm163_vm0 = vcmp.lt.s32.totalorder %v158_v2, 8  ;;  %vm161_vm1 = vcmp.ge.s32.totalorder %v158_v2, 16  ;;  %vm165_vm2 = vcmp.lt.s32.totalorder %v158_v2, 24  ;;  %vm162_vm3 = vcmp.ge.s32.totalorder %v158_v2, 24  ;;  %1741 = vmatpush3.msra.mxu0 %v66_v6  ;;  %s1943_s15 = scalar_lea.vmem %s1648_s14, 256  ;;  %p1948_p2 = scmp.lt.s32.totalorder %s1648_s14, %s1648_s14 }
  0x2a   :  { %v2030_v3 = vsel %vm163_vm0, 1.0, %v1974_v1  ;;  %vm169_vm4 = vmand %vm161_vm1, %vm165_vm2  ;;  %vm166_vm5 = vcmp.lt.s32.totalorder %v158_v2, 32  ;;  %vm160_vm8 = vcmp.ge.s32.totalorder %v158_v2, 8  ;;  %vm164_vm9 = vcmp.lt.s32.totalorder %v158_v2, 16  ;;  %1742 = vmatprep.subr.mxu0 %v65_v9  ;;  %p1944_p1 = scmp.ne.s32.totalorder %s1648_s14, %s1943_s15  ;;  %p1949_p3 = scmp.lt.s32.totalorder %s1943_s15, %s1943_s15 }
  0x2b   :  { %183 = vrot.lane.b32.xlu0 %v2030_v3, %s1975_s0  ;;  %v2034_v4 = vsel %vm169_vm4, 1.0, %v1974_v1  ;;  %vm170_vm7 = vmand %vm162_vm3, %vm166_vm5  ;;  %1743 = vmatpush3.msra.mxu0 %v65_v9 }
  0x2c   :  { %187 = vrot.lane.b32.xlu1 %v2034_v4, %s1975_s0  ;;  %v2038_v8 = vsel %vm170_vm7, 1.0, %v1974_v1  ;;  %vm168_vm10 = vmand %vm160_vm8, %vm164_vm9  ;;  %1744 = vmatprep.subr.mxu0 %v64_v11  ;;  %p1950_p4 = por %p1949_p3, %p1948_p2 }
  0x2d   :  { %v2042_v10 = vsel %vm168_vm10, 1.0, %v1974_v1  ;;  %1745 = vmatpush3.msra.mxu0 %v64_v11 }
  0x2e   :  { %1747 = vmatmul.mubr.msk.f32.vlgmr.msra.gmra.mxu0 %vm75_vm6, %v63_v12  ;;  %1769 = vmatprep.subr.mxu0 %v1974_v1  ;;  %p1951_p5 = pnand %p1950_p4, %p1944_p1 }
  0x2f   :  { %185 = vrot.lane.b32.xlu0 %v2042_v10, %s1975_s0  ;;  %1771 = vmatprep.mubr.msk.f32.mxu0 %vm1976_vm11, %v1974_v1 }
  0x30   :  { %189 = vrot.lane.b32.xlu1 %v2038_v8, %s1975_s0 }
  0x9d   :  { %v184_v13 = vpop.permute.xlu0 %183 }
  0x9e   :  { %v188_v15 = vpop.permute.xlu1 %187 }
  0xa1   :  { %v186_v19 = vpop.permute.xlu0 %185 }
  0xa2   :  { %v190_v22 = vpop.permute.xlu1 %189 }
  0xee   :  { %v1748_v14 = vpop.f32.mrf.mxu0 }
  0xef   :  { %v2059_v23 = vadd.f32 %v1748_v14, %v1660_v16 }
  0xf0   :  { %v148_v17 = vpop.f32.mrf.mxu0 }
  0xf1   :  { %v2055_v18 = vadd.f32 %v1660_v16, %v148_v17  ;;  %v200_v26 = vmul.f32 %v186_v19, %v2059_v23  ;;  %v199_v27 = vmul.f32 %v184_v13, %v2059_v23  ;;  %v202_v28 = vmul.f32 %v190_v22, %v2059_v23 }
  0xf2   :  { %v201_v29 = vmul.f32 %v188_v15, %v2059_v23 }
  0xf3   :  { %v196_v20 = vmul.f32 %v186_v19, %v2055_v18  ;;  %v195_v21 = vmul.f32 %v184_v13, %v2055_v18  ;;  %v198_v24 = vmul.f32 %v190_v22, %v2055_v18  ;;  %v197_v25 = vmul.f32 %v188_v15, %v2055_v18 }
  0xf5   :  { %302 = vrot.lane.b32.xlu1 %v196_v20, %s1977_s10  ;;  %224 = vrot.lane.b32.xlu0 %v195_v21, %s1977_s10 }
  0xf9   :  { %452 = vrot.lane.b32.xlu1 %v198_v24, %s1977_s10  ;;  %377 = vrot.lane.b32.xlu0 %v197_v25, %s1977_s10 }
  0xfd   :  { %605 = vrot.lane.b32.xlu1 %v200_v26, %s1977_s10  ;;  %527 = vrot.lane.b32.xlu0 %v199_v27, %s1977_s10 }
 0x101   :  { %755 = vrot.lane.b32.xlu1 %v202_v28, %s1977_s10  ;;  %680 = vrot.lane.b32.xlu0 %v201_v29, %s1977_s10 }
 0x167   :  { %v225_v30 = vpop.permute.xlu0 %224  ;;  %v303_v31 = vpop.permute.xlu1 %302 }
 0x168   :  { %1750 = vmatpush3.xpose.msk.msra.mxu1 %vm75_vm6, %v225_v30 }
 0x169   :  { %1754 = vmatprep.subr.mxu1 %v1974_v1 }
 0x16b   :  { %1752 = vmatmul.mubr.msk.f32.vlgmr.msra.gmra.mxu1 %vm75_vm6, %v2055_v18  ;;  %v378_v32 = vpop.permute.xlu0 %377  ;;  %v453_v33 = vpop.permute.xlu1 %452 }
 0x16c   :  { %1755 = vmatpush3.xpose.msk.msra.mxu1 %vm75_vm6, %v303_v31  ;;  %1756 = vmatprep.mubr.msk.f32.mxu1 %vm1976_vm11, %v1974_v1 }
 0x16d   :  { %1759 = vmatprep.subr.mxu1 %v1974_v1 }
 0x16f   :  { %1757 = vmatmul.mubr.msk.f32.vlgmr.msra.gmra.mxu1 %vm75_vm6, %v2055_v18  ;;  %v528_v34 = vpop.permute.xlu0 %527  ;;  %v606_v36 = vpop.permute.xlu1 %605 }
 0x170   :  { %1760 = vmatpush3.xpose.msk.msra.mxu1 %vm75_vm6, %v378_v32  ;;  %1770 = vmatpush3.xpose.msk.msra.mxu0 %vm75_vm6, %v528_v34 }
 0x171   :  { %1761 = vmatprep.mubr.msk.f32.mxu1 %vm1976_vm11, %v1974_v1  ;;  %1764 = vmatprep.subr.mxu1 %v1974_v1 }
 0x172   :  { %1779 = vmatprep.subr.mxu0 %v1974_v1 }
 0x173   :  { %1762 = vmatmul.mubr.msk.f32.vlgmr.msra.gmra.mxu1 %vm75_vm6, %v2055_v18  ;;  %1772 = vmatmul.mubr.msk.f32.vlgmr.msra.gmra.mxu0 %vm75_vm6, %v2059_v23  ;;  %v681_v35 = vpop.permute.xlu0 %680  ;;  %v756_v37 = vpop.permute.xlu1 %755 }
 0x174   :  { %1765 = vmatpush3.xpose.msk.msra.mxu1 %vm75_vm6, %v453_v33  ;;  %1780 = vmatpush3.xpose.msk.msra.mxu0 %vm75_vm6, %v681_v35 }
 0x175   :  { %1766 = vmatprep.mubr.msk.f32.mxu1 %vm1976_vm11, %v1974_v1  ;;  %1781 = vmatprep.mubr.msk.f32.mxu0 %vm1976_vm11, %v1974_v1 }
 0x176   :  { %1774 = vmatprep.subr.mxu1 %v1974_v1  ;;  %1789 = vmatprep.subr.mxu0 %v1974_v1 }
 0x177   :  { %1767 = vmatmul.mubr.msk.f32.vlgmr.msra.gmra.mxu1 %vm75_vm6, %v2055_v18  ;;  %1782 = vmatmul.mubr.msk.f32.vlgmr.msra.gmra.mxu0 %vm75_vm6, %v2059_v23 }
 0x178   :  { %1775 = vmatpush3.xpose.msk.msra.mxu1 %vm75_vm6, %v606_v36  ;;  %1776 = vmatprep.mubr.msk.f32.mxu1 %vm1976_vm11, %v1974_v1 }
 0x179   :  { %1784 = vmatprep.subr.mxu1 %v1974_v1  ;;  %1791 = vmatprep.mubr.msk.f32.mxu0 %vm1976_vm11, %v1974_v1 }
 0x17b   :  { %1777 = vmatmul.mubr.msk.f32.vlgmr.msra.gmra.mxu1 %vm75_vm6, %v2059_v23 }
 0x17c   :  { %1785 = vmatpush3.xpose.msk.msra.mxu1 %vm75_vm6, %v756_v37  ;;  %1786 = vmatprep.mubr.msk.f32.mxu1 %vm1976_vm11, %v1974_v1 }
 0x17d   :  { %1794 = vmatprep.subr.mxu1 %v1974_v1 }
 0x17f   :  { %1787 = vmatmul.mubr.msk.f32.vlgmr.msra.gmra.mxu1 %vm75_vm6, %v2059_v23 }
 0x180   :  { %1796 = vmatprep.mubr.msk.f32.mxu1 %vm1976_vm11, %v1974_v1 }
 0x22b   :  { %v297_v38 = vpop.f32.mrf.mxu1 }
 0x22c   :  { %v830_v39 = vsel %vm829_vm12, %v297_v38, -inf }
 0x22d   :  { %831 = vmax.xlane.f32.xlu0 %v830_v39  ;;  %v1753_v40 = vpop.f32.mrf.mxu1 }
 0x22f   :  { %v2116_v41 = vpop.f32.mrf.mxu1 }
 0x230   :  { %v833_v42 = vsel %vm829_vm12, %v2116_v41, -inf }
 0x231   :  { %834 = vmax.xlane.f32.xlu1 %v833_v42  ;;  %v1758_v43 = vpop.f32.mrf.mxu1 }
 0x233   :  { %v447_v44 = vpop.f32.mrf.mxu1  ;;  %v600_v45 = vpop.f32.mrf.mxu0 }
 0x234   :  { %v836_v46 = vsel %vm829_vm12, %v447_v44, -inf  ;;  %v842_v47 = vsel %vm829_vm12, %v600_v45, -inf }
 0x235   :  { %837 = vmax.xlane.f32.xlu0 %v836_v46  ;;  %v1763_v48 = vpop.f32.mrf.mxu1  ;;  %843 = vmax.xlane.f32.xlu1 %v842_v47  ;;  %v1773_v49 = vpop.f32.mrf.mxu0 }
 0x237   :  { %v522_v50 = vpop.f32.mrf.mxu1  ;;  %v750_v51 = vpop.f32.mrf.mxu0 }
 0x238   :  { %v839_v52 = vsel %vm829_vm12, %v522_v50, -inf  ;;  %v848_v53 = vsel %vm829_vm12, %v750_v51, -inf }
 0x239   :  { %840 = vmax.xlane.f32.xlu0 %v839_v52  ;;  %v1768_v54 = vpop.f32.mrf.mxu1  ;;  %849 = vmax.xlane.f32.xlu1 %v848_v53  ;;  %v1783_v55 = vpop.f32.mrf.mxu0 }
 0x23b   :  { %v675_v56 = vpop.f32.mrf.mxu1 }
 0x23c   :  { %v845_v57 = vsel %vm829_vm12, %v675_v56, -inf }
 0x23d   :  { %846 = vmax.xlane.f32.xlu0 %v845_v57  ;;  %v1778_v58 = vpop.f32.mrf.mxu1 }
 0x23f   :  { %v825_v59 = vpop.f32.mrf.mxu1 }
 0x240   :  { %v851_v60 = vsel %vm829_vm12, %v825_v59, -inf }
 0x241   :  { %852 = vmax.xlane.f32.xlu0 %v851_v60  ;;  %v1788_v61 = vpop.f32.mrf.mxu1 }
 0x24a   :  { %203 = vrot.lane.b32.xlu1 %v2030_v3, %s1978_s2 }
 0x24e   :  { %207 = vrot.lane.b32.xlu1 %v2034_v4, %s1978_s2 }
 0x252   :  { %209 = vrot.lane.b32.xlu1 %v2038_v8, %s1978_s2 }
 0x257   :  { %205 = vrot.lane.b32.xlu0 %v2042_v10, %s1978_s2 }
 0x2b6   :  { %v832_v62 = vpop.xlane.xlu0 %831 }
 0x2b7   :  { %v854_v16 = vsub.f32 %v297_v38, %v832_v62 }
 0x2b9   :  { %v862_v19 = vmul.f32 1.442695, %v854_v16 }
 0x2ba   :  { %v835_v63 = vpop.xlane.xlu1 %834 }
 0x2bb   :  { %1851 = vpow2.f32 %v862_v19  ;;  %v855_v26 = vsub.f32 %v2116_v41, %v835_v63 }
 0x2bd   :  { %v864_v29 = vmul.f32 1.442695, %v855_v26 }
 0x2be   :  { %v844_v0 = vpop.xlane.xlu1 %843  ;;  %v838_v2 = vpop.xlane.xlu0 %837 }
 0x2bf   :  { %v858_v17 = vsub.f32 %v600_v45, %v844_v0  ;;  %v856_v20 = vsub.f32 %v447_v44, %v838_v2 }
 0x2c1   :  { %v870_v21 = vmul.f32 1.442695, %v858_v17  ;;  %v866_v24 = vmul.f32 1.442695, %v856_v20 }
 0x2c2   :  { %v850_v5 = vpop.xlane.xlu1 %849  ;;  %v841_v6 = vpop.xlane.xlu0 %840 }
 0x2c3   :  { %v860_v22 = vsub.f32 %v750_v51, %v850_v5  ;;  %v857_v25 = vsub.f32 %v522_v50, %v841_v6  ;;  %1853 = vpow2.f32 %v870_v21  ;;  %v1551_v21 = vld [vmem:[#allocation7 + $0x18] sm:$0xff] }
 0x2c4   :  { %1855 = vpow2.f32 %v866_v24  ;;  %v1549_v24 = vld [vmem:[#allocation7 + $0x8] sm:$0xff] }
 0x2c5   :  { %v868_v27 = vmul.f32 1.442695, %v857_v25  ;;  %v1548_v25 = vld [vmem:[#allocation7] sm:$0xff] }
 0x2c6   :  { %v204_v7 = vpop.permute.xlu1 %203  ;;  %v847_v9 = vpop.xlane.xlu0 %846 }
 0x2c7   :  { %v215_v11 = vmul.f32 %v204_v7, %v2055_v18  ;;  %v219_v15 = vmul.f32 %v204_v7, %v2059_v23  ;;  %v859_v28 = vsub.f32 %v675_v56, %v847_v9 }
 0x2c8   :  { %v1852_v33 = vpop.eup %1851 }
 0x2c9   :  { %919 = vrot.lane.b32.xlu1 %v215_v11, %s1978_s2  ;;  %v872_v30 = vmul.f32 1.442695, %v859_v28  ;;  %v878_v35 = vsel %vm829_vm12, %v1852_v33, 0.0 }
 0x2ca   :  { %v2136_v3 = vpop.permute.xlu1 %207  ;;  %v853_v4 = vpop.xlane.xlu0 %852 }
 0x2cb   :  { %v217_v8 = vmul.f32 %v2136_v3, %v2055_v18  ;;  %v861_v31 = vsub.f32 %v825_v59, %v853_v4  ;;  %v221_v51 = vmul.f32 %v2136_v3, %v2059_v23 }
 0x2cd   :  { %1073 = vrot.lane.b32.xlu1 %v217_v8, %s1978_s2  ;;  %v876_v32 = vmul.f32 1.442695, %v861_v31 }
 0x2ce   :  { %v210_v10 = vpop.permute.xlu1 %209  ;;  %v206_v12 = vpop.permute.xlu0 %205 }
 0x2cf   :  { %v218_v13 = vmul.f32 %v210_v10, %v2055_v18  ;;  %v216_v14 = vmul.f32 %v206_v12, %v2055_v18  ;;  %v874_v18 = vmul.f32 1.442695, %v860_v22  ;;  %v220_v49 = vmul.f32 %v206_v12, %v2059_v23  ;;  %v1550_v22 = vld [vmem:[#allocation7 + $0x10] sm:$0xff] }
 0x2d0   :  { %v2148_v34 = vpop.eup %1853  ;;  %v222_v50 = vmul.f32 %v210_v10, %v2059_v23 }
 0x2d1   :  { %1150 = vrot.lane.b32.xlu1 %v218_v13, %s1978_s2  ;;  %996 = vrot.lane.b32.xlu0 %v216_v14, %s1978_s2  ;;  %1857 = vpow2.f32 %v874_v18  ;;  %v1856_v36 = vpop.eup %1855  ;;  %v890_v37 = vsel %vm829_vm12, %v2148_v34, 0.0 }
 0x2d2   :  { %1859 = vpow2.f32 %v868_v27  ;;  %v884_v39 = vsel %vm829_vm12, %v1856_v36, 0.0 }
 0x2d3   :  { %1861 = vpow2.f32 %v864_v29 }
 0x2d4   :  { %1863 = vpow2.f32 %v872_v30 }
 0x2d5   :  { %1227 = vrot.lane.b32.xlu0 %v219_v15, %s1978_s2  ;;  %1865 = vpow2.f32 %v876_v32 }
 0x2de   :  { %v2153_v38 = vpop.eup %1857 }
 0x2df   :  { %v2156_v40 = vpop.eup %1859  ;;  %v896_v41 = vsel %vm829_vm12, %v2153_v38, 0.0 }
 0x2e0   :  { %v1862_v42 = vpop.eup %1861  ;;  %v887_v43 = vsel %vm829_vm12, %v2156_v40, 0.0 }
 0x2e1   :  { %v2162_v44 = vpop.eup %1863  ;;  %v881_v45 = vsel %vm829_vm12, %v1862_v42, 0.0 }
 0x2e2   :  { %v893_v46 = vsel %vm829_vm12, %v2162_v44, 0.0  ;;  %v2167_v47 = vpop.eup %1865 }
 0x2e3   :  { %v899_v48 = vsel %vm829_vm12, %v2167_v47, 0.0 }
 0x2f4   :  { %879 = vadd.xlane.f32.xlu0 %v878_v35 }
 0x2f5   :  { %891 = vadd.xlane.f32.xlu1 %v890_v37 }
 0x2f8   :  { %885 = vadd.xlane.f32.xlu0 %v884_v39 }
 0x2f9   :  { %897 = vadd.xlane.f32.xlu1 %v896_v41 }
 0x2fc   :  { %888 = vadd.xlane.f32.xlu0 %v887_v43 }
 0x2fd   :  { %882 = vadd.xlane.f32.xlu1 %v881_v45 }
 0x300   :  { %894 = vadd.xlane.f32.xlu0 %v893_v46 }
 0x304   :  { %900 = vadd.xlane.f32.xlu0 %v899_v48 }
 0x30e   :  { %1304 = vrot.lane.b32.xlu1 %v220_v49, %s1978_s2 }
 0x312   :  { %1458 = vrot.lane.b32.xlu1 %v222_v50, %s1978_s2 }
 0x31a   :  { %1381 = vrot.lane.b32.xlu0 %v221_v51, %s1978_s2 }
 0x33b   :  { %v920_v52 = vpop.permute.xlu1 %919 }
 0x33c   :  { %1790 = vmatpush3.msra.mxu0 %v920_v52 }
 0x33d   :  { %1799 = vmatprep.subr.mxu0 %v1974_v1 }
 0x33f   :  { %v1074_v54 = vpop.permute.xlu1 %1073 }
 0x343   :  { %v997_v53 = vpop.permute.xlu0 %996  ;;  %v1151_v56 = vpop.permute.xlu1 %1150 }
 0x344   :  { %1795 = vmatpush3.msra.mxu1 %v997_v53 }
 0x345   :  { %1804 = vmatprep.subr.mxu1 %v1974_v1 }
 0x347   :  { %v1228_v55 = vpop.permute.xlu0 %1227 }
 0x37d   :  { %v880_v57 = vpop.xlane.xlu0 %879 }
 0x37e   :  { %1867 = vrcp.f32 %v880_v57  ;;  %v892_v58 = vpop.xlane.xlu1 %891 }
 0x381   :  { %v886_v59 = vpop.xlane.xlu0 %885 }
 0x382   :  { %1869 = vrcp.f32 %v886_v59  ;;  %v898_v60 = vpop.xlane.xlu1 %897 }
 0x383   :  { %1871 = vrcp.f32 %v892_v58 }
 0x385   :  { %v889_v23 = vpop.xlane.xlu0 %888 }
 0x386   :  { %v883_v61 = vpop.xlane.xlu1 %882 }
 0x387   :  { %1873 = vrcp.f32 %v883_v61 }
 0x388   :  { %1875 = vrcp.f32 %v898_v60 }
 0x389   :  { %1877 = vrcp.f32 %v889_v23  ;;  %v895_v62 = vpop.xlane.xlu0 %894 }
 0x38a   :  { %1879 = vrcp.f32 %v895_v62  ;;  %v1305_v13 = vpop.permute.xlu1 %1304 }
 0x38b   :  { %v1868_v63 = vpop.eup %1867 }
 0x38c   :  { %v910_v0 = vmul.f32 %v1868_v63, %v1852_v33 }
 0x38d   :  { %v901_v2 = vpop.xlane.xlu0 %900 }
 0x38e   :  { %1792 = vmatmul.mubr.msk.f32.vlgmr.msra.gmra.mxu0 %vm829_vm12, %v910_v0  ;;  %1881 = vrcp.f32 %v901_v2  ;;  %v1459_v19 = vpop.permute.xlu1 %1458 }
 0x38f   :  { %v1870_v5 = vpop.eup %1869  ;;  %1800 = vmatpush3.msra.mxu0 %v1074_v54  ;;  %1801 = vmatprep.mubr.msk.f32.mxu0 %vm1976_vm11, %v1974_v1  ;;  %v1691_v54 = vld [vmem:[%s2234_s4] ss:$0 sm:$0xff] }
 0x390   :  { %1809 = vmatprep.subr.mxu0 %v1974_v1  ;;  %v912_v6 = vmul.f32 %v1870_v5, %v1856_v36  ;;  %v1872_v7 = vpop.eup %1871 }
 0x391   :  { %v914_v11 = vmul.f32 %v1872_v7, %v2148_v34  ;;  %v1382_v10 = vpop.permute.xlu0 %1381 }
 0x392   :  { %1802 = vmatmul.mubr.msk.f32.vlgmr.msra.gmra.mxu0 %vm829_vm12, %v912_v6 }
 0x393   :  { %1810 = vmatpush3.msra.mxu0 %v1228_v55  ;;  %1811 = vmatprep.mubr.msk.f32.mxu0 %vm1976_vm11, %v1974_v1 }
 0x394   :  { %v1874_v9 = vpop.eup %1873  ;;  %1819 = vmatprep.subr.mxu0 %v1974_v1 }
 0x395   :  { %v1876_v3 = vpop.eup %1875  ;;  %v911_v4 = vmul.f32 %v1874_v9, %v1862_v42 }
 0x396   :  { %v1878_v8 = vpop.eup %1877  ;;  %1812 = vmatmul.mubr.msk.f32.vlgmr.msra.gmra.mxu0 %vm829_vm12, %v914_v11  ;;  %v916_v12 = vmul.f32 %v1876_v3, %v2153_v38 }
 0x397   :  { %1820 = vmatpush3.msra.mxu0 %v1382_v10  ;;  %1797 = vmatmul.mubr.msk.f32.vlgmr.msra.gmra.mxu1 %vm829_vm12, %v911_v4  ;;  %v913_v14 = vmul.f32 %v1878_v8, %v2156_v40  ;;  %v1880_v15 = vpop.eup %1879 }
 0x398   :  { %1805 = vmatpush3.msra.mxu1 %v1151_v56  ;;  %1821 = vmatprep.mubr.msk.f32.mxu0 %vm1976_vm11, %v1974_v1  ;;  %v915_v16 = vmul.f32 %v1880_v15, %v2162_v44 }
 0x399   :  { %1806 = vmatprep.mubr.msk.f32.mxu1 %vm1976_vm11, %v1974_v1  ;;  %1814 = vmatprep.subr.mxu1 %v1974_v1 }
 0x39a   :  { %1822 = vmatmul.mubr.msk.f32.vlgmr.msra.gmra.mxu0 %vm829_vm12, %v916_v12  ;;  %1829 = vmatprep.subr.mxu0 %v1551_v21 }
 0x39b   :  { %1807 = vmatmul.mubr.msk.f32.vlgmr.msra.gmra.mxu1 %vm829_vm12, %v913_v14  ;;  %v1882_v17 = vpop.eup %1881  ;;  %1830 = vmatpush3.msra.mxu0 %v1551_v21 }
 0x39c   :  { %1815 = vmatpush3.msra.mxu1 %v1305_v13  ;;  %1816 = vmatprep.mubr.msk.f32.mxu1 %vm1976_vm11, %v1974_v1  ;;  %v917_v20 = vmul.f32 %v1882_v17, %v2167_v47 }
 0x39d   :  { %1824 = vmatprep.subr.mxu1 %v1974_v1  ;;  %1831 = vmatprep.subr.mxu0 %v1550_v22 }
 0x39e   :  { %1832 = vmatpush3.msra.mxu0 %v1550_v22 }
 0x39f   :  { %1817 = vmatmul.mubr.msk.f32.vlgmr.msra.gmra.mxu1 %vm829_vm12, %v915_v16  ;;  %1833 = vmatprep.subr.mxu0 %v1549_v24 }
 0x3a0   :  { %1825 = vmatpush3.msra.mxu1 %v1459_v19  ;;  %1826 = vmatprep.mubr.msk.f32.mxu1 %vm1976_vm11, %v1974_v1 }
 0x3a1   :  { %1834 = vmatpush3.msra.mxu0 %v1549_v24 }
 0x3a2   :  { %1835 = vmatprep.subr.mxu0 %v1548_v25 }
 0x3a3   :  { %1827 = vmatmul.mubr.msk.f32.vlgmr.msra.gmra.mxu1 %vm829_vm12, %v917_v20  ;;  %1836 = vmatpush3.msra.mxu0 %v1548_v25 }
 0x44e   :  { %v991_v26 = vpop.f32.mrf.mxu0 }
 0x44f   :  { %v1534_v30 = vsel %vm75_vm6, %v991_v26, 0.0 }
 0x450   :  { %v1793_v18 = vpop.f32.mrf.mxu0 }
 0x452   :  { %v1145_v27 = vpop.f32.mrf.mxu0 }
 0x453   :  { %v1537_v35 = vsel %vm75_vm6, %v1145_v27, 0.0 }
 0x454   :  { %v1803_v1 = vpop.f32.mrf.mxu0 }
 0x456   :  { %v1299_v28 = vpop.f32.mrf.mxu0 }
 0x457   :  { %v1068_v29 = vpop.f32.mrf.mxu1  ;;  %v1541_v44 = vsel %vm75_vm6, %v1299_v28, 0.0 }
 0x458   :  { %v1535_v31 = vsel %vm75_vm6, %v1068_v29, 0.0  ;;  %v1813_v32 = vpop.f32.mrf.mxu0 }
 0x459   :  { %v1536_v33 = vadd.f32 %v1535_v31, %v1534_v30  ;;  %v1798_v34 = vpop.f32.mrf.mxu1 }
 0x45a   :  { %v1453_v36 = vpop.f32.mrf.mxu0 }
 0x45b   :  { %v1222_v37 = vpop.f32.mrf.mxu1  ;;  %v1538_v38 = vadd.f32 %v1537_v35, %v1536_v33  ;;  %v1544_v48 = vsel %vm75_vm6, %v1453_v36, 0.0 }
 0x45c   :  { %v1539_v39 = vsel %vm75_vm6, %v1222_v37, 0.0  ;;  %v1823_v40 = vpop.f32.mrf.mxu0 }
 0x45d   :  { %v1540_v41 = vadd.f32 %v1539_v39, %v1538_v38  ;;  %v1808_v42 = vpop.f32.mrf.mxu1 }
 0x45f   :  { %v1376_v43 = vpop.f32.mrf.mxu1  ;;  %1837 = vmatprep.mubr.msk.f32.mxu0 %vm75_vm6, %v1540_v41 }
 0x460   :  { %v1542_v45 = vsel %vm75_vm6, %v1376_v43, 0.0 }
 0x461   :  { %v1543_v46 = vadd.f32 %v1542_v45, %v1541_v44  ;;  %v1818_v47 = vpop.f32.mrf.mxu1 }
 0x463   :  { %v1530_v49 = vpop.f32.mrf.mxu1  ;;  %v1545_v50 = vadd.f32 %v1544_v48, %v1543_v46 }
 0x464   :  { %v1546_v51 = vsel %vm75_vm6, %v1530_v49, 0.0 }
 0x465   :  { %v1547_v52 = vadd.f32 %v1546_v51, %v1545_v50  ;;  %v1828_v53 = vpop.f32.mrf.mxu1 }
 0x467   :  { %1838 = vmatmul.mubr.msk.f32.vlgmr.msra.gmra.mxu0 %vm75_vm6, %v1547_v52 }
 0x527   :  { %v1839_v55 = vpop.f32.mrf.mxu0 }
 0x528   :  { %v1637_v56 = vadd.f32 %v1839_v55, %v1691_v54 }
 0x529   :  { %v1631_v57 = vpop.f32.mrf.mxu0 }
 0x52a   :  { %1641 = vst.msk [vmem:[#allocation8 + $0x8] sm:$0xff] %vm75_vm6, %v1637_v56  ;;  %v1632_v58 = vadd.f32 %v1691_v54, %v1631_v57 }
 0x52c   :  { %1640 = vst.msk [vmem:[#allocation8] sm:$0xff] %vm75_vm6, %v1632_v58 }
 0x52d   :  { %1954 = shalt.err (!%p1951_p5)
}
 0x52e   :  { %1653 = dma.vmem_to_hbm [thread:$0]  %s1648_s14, 256, %s2235_s5, [#allocation4], %s1971_s23, %s1971_s23, %s1972_s24  }
 0x52f   :  { %1967 = dma.done.wait [#allocation4], 256  }
 0x530   :  { %1968 = vsyncadd [#allocation4], 4294967040 }
 0x531   :  { %1657 = vsyncpa [#allocation3], 1 }
 0x532   :  { %1658 = vsyncpa [#allocation6], 1 }
 0x533   :  { %1659 = vsyncpa [#allocation4], 1 }

</bundles_post_ra>
